<compile_context>
chip_gen: v7x
topology: tpu7x:2x2x1
jax: 0.10.0
libtpu: 0.0.40
codegen_flags: <defaults>
</compile_context>

<pallas_src>
import math

import jax
import jax.numpy as jnp
from jax.experimental import pallas as pl
from jax.experimental.pallas import tpu as pltpu

_LANES = 128
_SUBLANES = 8


def _round_up(n, m):
    return ((n + m - 1) // m) * m


def _linear_kernel(x_ref, w_ref, b_ref, o_ref):
    # x_ref: (tm, Kp), w_ref: (Kp, Np), b_ref: (1, Np), o_ref: (tm, Np)
    acc = jnp.dot(x_ref[...], w_ref[...], preferred_element_type=jnp.float32)
    o_ref[...] = (acc + b_ref[...].astype(jnp.float32)).astype(o_ref.dtype)


def pack_linear_params(weight, bias):
    """One-time parameter prep. Call OUTSIDE the per-step hot path.

    weight: (time_size, hidden)  -- PyTorch nn.Linear layout
    bias:   (time_size,)
    Returns (w_packed, b_packed, pack):
      pack     : number of logical rows folded into one 128-lane row
      w_packed : (pack*hidden, pack*time_size) block-diagonal copies of W^T
      b_packed : (1, pack*time_size) tiled bias
    """
    time_size, hidden = weight.shape
    if hidden < _LANES and _LANES % hidden == 0:
        pack = _LANES // hidden
    else:
        pack = 1

    w_t = jnp.transpose(weight)  # (hidden, time_size)
    if pack == 1:
        w_packed = w_t
        b_packed = bias.reshape(1, time_size)
    else:
        eye = jnp.eye(pack, dtype=w_t.dtype)
        w_packed = jnp.kron(eye, w_t)                       # (pack*H, pack*T)
        b_packed = jnp.tile(bias, pack).reshape(1, pack * time_size)
    return w_packed, b_packed, pack


def time_log_model_apply(x, w_packed, b_packed, pack, *, tm=1024):
    """y = x @ W^T + b using pre-packed params from pack_linear_params."""
    hidden = x.shape[-1]
    kp, np_ = w_packed.shape
    time_size = np_ // pack
    lead_shape = x.shape[:-1]

    x2d = x.reshape(-1, hidden)
    m = x2d.shape[0]

    # Fold `pack` logical rows into one 128-lane row (lane-dense loads).
    m_rows = _round_up(max(m, 1), pack)
    mp = m_rows // pack

    # Large M tile, but capped so tiny inputs are not over-padded; tm_eff is
    # always a multiple of 8 (sublane constraint).
    tm_eff = min(tm, _round_up(mp, _SUBLANES))
    mp_pad = _round_up(mp, tm_eff)

    total_rows = mp_pad * pack
    if total_rows != m:
        x2d = jnp.pad(x2d, ((0, total_rows - m), (0, 0)))
    xp = x2d.reshape(mp_pad, pack * hidden)  # (Mp, 128) when packed

    grid = (mp_pad // tm_eff,)

    out = pl.pallas_call(
        _linear_kernel,
        out_shape=jax.ShapeDtypeStruct((mp_pad, np_), x.dtype),
        grid_spec=pltpu.PrefetchScalarGridSpec(
            num_scalar_prefetch=0,
            grid=grid,
            in_specs=[
                pl.BlockSpec((tm_eff, kp), lambda i: (i, 0)),
                pl.BlockSpec((kp, np_), lambda i: (0, 0)),   # resident weight
                pl.BlockSpec((1, np_), lambda i: (0, 0)),    # resident bias
            ],
            out_specs=pl.BlockSpec((tm_eff, np_), lambda i: (i, 0)),
        ),
        compiler_params=pltpu.CompilerParams(
            dimension_semantics=("parallel",),
            vmem_limit_bytes=32 * 1024 * 1024,
        ),
    )(xp, w_packed, b_packed)

    # Unpack: row r, col q*T+t  <->  logical row r*pack+q, feature t.
    y = out.reshape(total_rows, time_size)[:m]
    return y.reshape(*lead_shape, time_size)


def time_log_model_forward(x, weight, bias, *, tm=1024):
    """Equivalent of TimeLogModel.forward: self.linear(x).

    Convenience wrapper; for repeated calls prefer pack_linear_params once and
    time_log_model_apply in the hot loop.
    """
    w_packed, b_packed, pack = pack_linear_params(weight, bias)
    return time_log_model_apply(x, w_packed, b_packed, pack, tm=tm)


def init_params(key, hidden, time_size=1, dtype=jnp.float32):
    """Deterministic init matching nn.Linear's U(-1/sqrt(hidden), 1/sqrt(hidden))."""
    kw, kb = jax.random.split(key)
    bound = 1.0 / math.sqrt(hidden)
    weight = jax.random.uniform(kw, (time_size, hidden), dtype,
                                minval=-bound, maxval=bound)
    bias = jax.random.uniform(kb, (time_size,), dtype,
                              minval=-bound, maxval=bound)
    return weight, bias


if __name__ == "__main__":
    key = jax.random.PRNGKey(0)
    k_x, k_p = jax.random.split(key)

    batch, seq, hidden, time_size = 2, 8, 32, 1
    x = jax.random.normal(k_x, (batch, seq, hidden), dtype=jnp.float32)
    weight, bias = init_params(k_p, hidden, time_size)

    # One-time packing (outside the hot path), then apply.
    w_packed, b_packed, pack = pack_linear_params(weight, bias)
    y = time_log_model_apply(x, w_packed, b_packed, pack)
    y = jax.block_until_ready(y)

    # Reference check in plain JAX (same math as torch nn.Linear).
    y_ref = x @ weight.T + bias
    assert y.shape == (batch, seq, time_size)
    assert jnp.allclose(y, y_ref, atol=1e-5, rtol=1e-5)

    # Also exercise the convenience wrapper.
    y2 = jax.block_until_ready(time_log_model_forward(x, weight, bias))
    assert jnp.allclose(y2, y_ref, atol=1e-5, rtol=1e-5)

    print("KERNEL_OK")
</pallas_src>

<mosaic_0001>
module attributes {stable_mosaic.version = 11 : i64} {
  func.func @_linear_kernel(%arg0: i32, %arg1: memref<8x128xf32, #tpu.memory_space<vmem>>, %arg2: memref<128x4xf32, #tpu.memory_space<vmem>>, %arg3: memref<1x4xf32, #tpu.memory_space<vmem>>, %arg4: memref<8x4xf32, #tpu.memory_space<vmem>>) attributes {dimension_semantics = [#tpu.dimension_semantics<parallel>], iteration_bounds = array<i64: 1>, scalar_prefetch = 0 : i64, scratch_operands = 0 : i64, tpu.core_type = #tpu.core_type<tc>, window_params = [{transform_indices = @transform_0, window_bounds = array<i64: 8, 128>}, {pipeline_mode = #tpu.pipeline_mode<synchronous>, transform_indices = @transform_1, window_bounds = array<i64: 128, 4>}, {pipeline_mode = #tpu.pipeline_mode<synchronous>, transform_indices = @transform_2, window_bounds = array<i64: 1, 4>}, {transform_indices = @transform_3, window_bounds = array<i64: 8, 4>}]} {
    %c0 = arith.constant 0 : index
    %c0_0 = arith.constant 0 : index
    %0 = vector.load %arg1[%c0, %c0_0] : memref<8x128xf32, #tpu.memory_space<vmem>>, vector<8x128xf32>
    %c0_1 = arith.constant 0 : index
    %c0_2 = arith.constant 0 : index
    %1 = vector.load %arg2[%c0_1, %c0_2] : memref<128x4xf32, #tpu.memory_space<vmem>>, vector<128x4xf32>
    %cst = arith.constant dense<0.000000e+00> : vector<8x4xf32>
    %2 = tpu.matmul %0, %1, %cst {dimension_numbers = #tpu.dot_dimension_numbers<[1], [0], [0], [1], [0, 0, 1, 1], [], []>} : vector<8x128xf32>, vector<128x4xf32>, vector<8x4xf32> -> vector<8x4xf32>
    %c0_3 = arith.constant 0 : index
    %c0_4 = arith.constant 0 : index
    %3 = vector.load %arg3[%c0_3, %c0_4] : memref<1x4xf32, #tpu.memory_space<vmem>>, vector<1x4xf32>
    %4 = vector.broadcast %3 : vector<1x4xf32> to vector<8x4xf32>
    %5 = arith.addf %2, %4 : vector<8x4xf32>
    %c0_5 = arith.constant 0 : index
    %c0_6 = arith.constant 0 : index
    %6 = vector.load %arg4[%c0_5, %c0_6] : memref<8x4xf32, #tpu.memory_space<vmem>>, vector<8x4xf32>
    tpu.vector_store %arg4[%c0_5, %c0_6], %5 {strides = array<i32>} : memref<8x4xf32, #tpu.memory_space<vmem>>, vector<8x4xf32>,
    return
  }
  func.func @transform_0(%arg0: i32) -> (i32, i32) {
    %c0_i32 = arith.constant 0 : i32
    %c0_i32_0 = arith.constant 0 : i32
    return %arg0, %c0_i32 : i32, i32
  }
  func.func @transform_1(%arg0: i32) -> (i32, i32) {
    %c0_i32 = arith.constant 0 : i32
    %c0_i32_0 = arith.constant 0 : i32
    %c0_i32_1 = arith.constant 0 : i32
    return %c0_i32, %c0_i32_0 : i32, i32
  }
  func.func @transform_2(%arg0: i32) -> (i32, i32) {
    %c0_i32 = arith.constant 0 : i32
    %c0_i32_0 = arith.constant 0 : i32
    %c0_i32_1 = arith.constant 0 : i32
    return %c0_i32, %c0_i32_0 : i32, i32
  }
  func.func @transform_3(%arg0: i32) -> (i32, i32) {
    %c0_i32 = arith.constant 0 : i32
    %c0_i32_0 = arith.constant 0 : i32
    return %arg0, %c0_i32 : i32, i32
  }
}

</mosaic_0001>

<bundles_post_ra>
// kernel: tpu_custom_call.1
= control target key start
LH: loop header
LB: loop body
LE: loop exit
PB: predicated region body
PF: predicated region fallthrough
CT: control target
= control target key end

     0   :  { %v194_v0 = vmov 0.0|0.0   ;;  %vm195_vm0 = vmmov 0   ;;  %v196_v4 = vmov 0.0   ;;  %vm108_vm1 = vcmask 31744   ;;  %s274_s1 = inlined_call_operand.vmem [shape: f32[128,4], index: 1, kind: input, shape index: {}]   ;;  %s275_s0 = inlined_call_operand.vmem [shape: f32[8,128], index: 0, kind: input, shape index: {}]   ;;  %s276_s2 = inlined_call_operand.vmem [shape: f32[1,4], index: 2, kind: input, shape index: {}]   ;;  %s277_s3 = inlined_call_operand.vmem [shape: f32[8,4], index: 3, kind: output, shape index: {}]  }
   0x1   :  { %167 = vmatprep.subr.bf16.mxu0 %v194_v0  ;;  %v15_v1 = vld [vmem:[%s274_s1] sm:$0xff]  ;;  %v16_v2 = vld [vmem:[%s274_s1 + $0x8] sm:$0xff]  ;;  %v17_v3 = vld [vmem:[%s274_s1 + $0x10] sm:$0xff]  ;;  %164 = vmatprep.mubr.msk.f32.mxu0 %vm195_vm0, %v196_v4 }
   0x2   :  { %v168_v5 = vpack.c.bf16 %v16_v2, %v15_v1  ;;  %v18_v6 = vld [vmem:[%s274_s1 + $0x18] sm:$0xff]  ;;  %v19_v8 = vld [vmem:[%s274_s1 + $0x20] sm:$0xff]  ;;  %v20_v9 = vld [vmem:[%s274_s1 + $0x28] sm:$0xff] }
   0x3   :  { %v171_v7 = vpack.c.bf16 %v18_v6, %v17_v3  ;;  %v174_v10 = vpack.c.bf16 %v20_v9, %v19_v8  ;;  %v21_v11 = vld [vmem:[%s274_s1 + $0x30] sm:$0xff]  ;;  %v22_v12 = vld [vmem:[%s274_s1 + $0x38] sm:$0xff]  ;;  %v23_v14 = vld [vmem:[%s274_s1 + $0x40] sm:$0xff] }
   0x4   :  { %169 = vmatpush3.bf16.msra.mxu0 %v168_v5  ;;  %v177_v13 = vpack.c.bf16 %v22_v12, %v21_v11  ;;  %v24_v15 = vld [vmem:[%s274_s1 + $0x48] sm:$0xff]  ;;  %v25_v17 = vld [vmem:[%s274_s1 + $0x50] sm:$0xff]  ;;  %v26_v18 = vld [vmem:[%s274_s1 + $0x58] sm:$0xff] }
   0x5   :  { %170 = vmatprep.subr.bf16.mxu0 %v194_v0  ;;  %v180_v16 = vpack.c.bf16 %v24_v15, %v23_v14  ;;  %v183_v19 = vpack.c.bf16 %v26_v18, %v25_v17  ;;  %v27_v20 = vld [vmem:[%s274_s1 + $0x60] sm:$0xff]  ;;  %v28_v21 = vld [vmem:[%s274_s1 + $0x68] sm:$0xff]  ;;  %v29_v23 = vld [vmem:[%s274_s1 + $0x70] sm:$0xff] }
   0x6   :  { %v186_v22 = vpack.c.bf16 %v28_v21, %v27_v20  ;;  %v30_v24 = vld [vmem:[%s274_s1 + $0x78] sm:$0xff]  ;;  %v14_v26 = vld [vmem:[%s275_s0] sm:$0xff] }
   0x7   :  { %v189_v25 = vpack.c.bf16 %v30_v24, %v29_v23  ;;  %v114_v27 = vld [vmem:[%s276_s2] ss:$0 sm:$0xff] }
   0x8   :  { %172 = vmatpush3.bf16.msra.mxu0 %v171_v7 }
   0x9   :  { %173 = vmatprep.subr.bf16.mxu0 %v194_v0 }
   0xc   :  { %175 = vmatpush3.bf16.msra.mxu0 %v174_v10 }
   0xd   :  { %176 = vmatprep.subr.bf16.mxu0 %v194_v0 }
  0x10   :  { %178 = vmatpush3.bf16.msra.mxu0 %v177_v13 }
  0x11   :  { %179 = vmatprep.subr.bf16.mxu0 %v194_v0 }
  0x14   :  { %181 = vmatpush3.bf16.msra.mxu0 %v180_v16 }
  0x15   :  { %182 = vmatprep.subr.bf16.mxu0 %v194_v0 }
  0x18   :  { %184 = vmatpush3.bf16.msra.mxu0 %v183_v19 }
  0x19   :  { %185 = vmatprep.subr.bf16.mxu0 %v194_v0 }
  0x1c   :  { %187 = vmatpush3.bf16.msra.mxu0 %v186_v22 }
  0x1d   :  { %188 = vmatprep.subr.bf16.mxu0 %v194_v0 }
  0x20   :  { %190 = vmatpush3.bf16.msra.mxu0 %v189_v25 }
  0x23   :  { %165 = vmatmul.mubr.f32.vlgmr.msra.gmra.mrb[0].mxu0 %v14_v26 }
  0xf6   :  { %v104_v28 = vpop.f32.mrb[0].mxu0 }
  0xf7   :  { %v105_v29 = vadd.f32 %v114_v27, %v104_v28  ;;  %v166_v30 = vpop.f32.mrb[1].mxu0 }
  0xf9   :  { %109 = vst.msk [vmem:[%s277_s3] sm:$0xff] %vm108_vm1, %v105_v29 }

</bundles_post_ra>
